<compile_context>
chip_gen: v7x
topology: tpu7x:2x2x1
jax: 0.10.0
libtpu: 0.0.40
codegen_flags: <defaults>
</compile_context>

<pallas_src>
import functools

import jax
import jax.numpy as jnp
from jax import lax
from jax.experimental import pallas as pl
from jax.experimental.pallas import tpu as pltpu


def _masked_ce_sum_kernel(t_ref, logits_ref, out_ref):
    """Accumulate sum of per-row NLL over rows whose combined target t >= 0."""
    i = pl.program_id(1)

    @pl.when(i == 0)
    def _():
        out_ref[...] = jnp.zeros_like(out_ref)

    # logits tile, upcast to f32 in-register (input streams bf16/f32 from HBM).
    logits = logits_ref[...].astype(jnp.float32)               # (tn, V)
    t = t_ref[...]                                              # (tn, 1) int32

    # log-sum-exp over the vocab (lane) axis
    m = jnp.max(logits, axis=-1, keepdims=True)                 # (tn, 1)
    lse = m + jnp.log(jnp.sum(jnp.exp(logits - m), axis=-1, keepdims=True))

    # target logit via one-hot select on the lane axis (t == -1 selects nothing)
    col = lax.broadcasted_iota(jnp.int32, logits.shape, 1)      # (tn, V)
    tgt = jnp.sum(jnp.where(col == t, logits, 0.0),
                  axis=-1, keepdims=True)                       # (tn, 1)

    # valid rows: masked token and not padding / ragged-tail garbage (t == -1).
    # where-select (not multiply) so garbage tail rows can never inject NaN.
    valid = t >= 0
    partial = jnp.sum(jnp.where(valid, lse - tgt, 0.0))         # scalar f32
    out_ref[...] += jnp.full(out_ref.shape, partial, dtype=out_ref.dtype)


def _vmem_capacity_bytes():
    try:
        cap = int(pltpu.get_tpu_info().vmem_capacity_bytes)
        if cap >= 16 * 1024 * 1024:
            return cap
    except Exception:
        pass
    return 64 * 1024 * 1024      # conservative fallback (v7x per-TC VMEM)


def _choose_row_tile(n_rows, vocab, itemsize, budget):
    """Largest row tile (multiple of 8) whose working set fits the VMEM budget."""
    # per-row VMEM estimate:
    #   2 * V * itemsize : logits block, double-buffered, native dtype
    #   8 * V            : f32 working copies / intermediates
    #   1024             : (tn,1) int32 target column on padded (8,128) tiles,
    #                      double-buffered (~512 B/row per buffer)
    per_row = 2 * vocab * itemsize + 8 * vocab + 1024
    tn = budget // per_row
    tn = int(max(8, min(tn, 64 * 1024)))
    tn = (tn // 8) * 8
    if tn >= n_rows:
        return n_rows                 # single block == full dim (always legal)
    return tn


@functools.partial(jax.jit, static_argnames=("mask_token_idx", "row_tile"))
def masked_character_loss(x, y, logits, mask_token_idx: int, row_tile=None):
    """x: [...] int, y: [...] int, logits: [..., V] -> scalar f32 mean CE over masked rows."""
    V = logits.shape[-1]
    N = x.size

    x_f = x.reshape(N).astype(jnp.int32)
    y_f = y.reshape(N).astype(jnp.int32)
    logits_f = logits.reshape(N, V)              # native dtype, no HBM copy

    vmem_cap = _vmem_capacity_bytes()
    budget = vmem_cap // 2                       # tile-sizing budget
    vmem_limit = min(vmem_cap * 3 // 4, 128 * 1024 * 1024)

    if row_tile is None:
        tn = _choose_row_tile(N, V, logits_f.dtype.itemsize, budget)
    else:
        tn = min(int(row_tile), N)
        if tn < N:
            tn = max(8, (tn // 8) * 8)

    num_blocks = pl.cdiv(N, tn)
    n_split = 2 if num_blocks >= 2 else 1        # v7x: one half per TensorCore
    per_core = pl.cdiv(num_blocks, n_split)
    padded_rows = n_split * per_core * tn

    mask = x_f == mask_token_idx
    # combined target column: y where masked, -1 otherwise; -1 in all padding.
    t = jnp.where(mask, y_f, -1)
    t = jnp.pad(t, (0, padded_rows - N), constant_values=-1).reshape(padded_rows, 1)

    if n_split * per_core > num_blocks:
        # last (duplicate) step of the second split re-reads the final real
        # logits block; its t rows are all -1 so it contributes nothing.
        logits_map = lambda c, i: (jnp.minimum(c * per_core + i, num_blocks - 1), 0)
    else:
        logits_map = lambda c, i: (c * per_core + i, 0)

    partials = pl.pallas_call(
        _masked_ce_sum_kernel,
        out_shape=jax.ShapeDtypeStruct((n_split, 1, 1), jnp.float32),
        grid_spec=pltpu.PrefetchScalarGridSpec(
            num_scalar_prefetch=0,
            grid=(n_split, per_core),
            in_specs=[
                pl.BlockSpec((tn, 1), lambda c, i: (c * per_core + i, 0)),
                pl.BlockSpec((tn, V), logits_map),
            ],
            out_specs=pl.BlockSpec((1, 1, 1), lambda c, i: (c, 0, 0)),
        ),
        compiler_params=pltpu.CompilerParams(
            dimension_semantics=("parallel", "arbitrary"),
            vmem_limit_bytes=int(vmem_limit),
        ),
    )(t, logits_f)

    total = jnp.sum(partials)
    cnt = jnp.sum(mask.astype(jnp.float32))      # cheap: N int32s in the wrapper
    return jnp.where(cnt > 0.0, total / jnp.maximum(cnt, 1.0), 0.0)


def _reference(x, y, logits, mask_token_idx):
    V = logits.shape[-1]
    xf = x.reshape(-1)
    yf = y.reshape(-1)
    lf = logits.reshape(-1, V).astype(jnp.float32)
    m = (xf == mask_token_idx).astype(jnp.float32)
    logp = jax.nn.log_softmax(lf, axis=-1)
    nll = -jnp.take_along_axis(logp, yf[:, None], axis=-1)[:, 0]
    cnt = jnp.sum(m)
    return jnp.where(cnt > 0, jnp.sum(nll * m) / jnp.maximum(cnt, 1.0), 0.0)


if __name__ == "__main__":
    key = jax.random.PRNGKey(0)
    kx, ky, kl = jax.random.split(key, 3)

    B, S, V = 2, 8, 32
    mask_token_idx = 3

    x = jax.random.randint(kx, (B, S), 0, 8, dtype=jnp.int32)       # some == 3
    y = jax.random.randint(ky, (B, S), 0, V, dtype=jnp.int32)
    logits = jax.random.normal(kl, (B, S, V), dtype=jnp.float32)

    loss = jax.block_until_ready(masked_character_loss(x, y, logits, mask_token_idx))
    ref = _reference(x, y, logits, mask_token_idx)
    assert jnp.allclose(loss, ref, rtol=1e-5, atol=1e-5), (loss, ref)

    # no-mask case must return exactly 0.0
    loss0 = jax.block_until_ready(
        masked_character_loss(x, y, logits, mask_token_idx=999))
    assert jnp.allclose(loss0, 0.0), loss0

    # bf16 logits + ragged tail + odd block count: exercises native-dtype
    # streaming, in-kernel tail neutralization (t == -1), and the 2-way core
    # split with a clamped duplicate last block.
    B2, S2 = 4, 37                                   # N = 148, row_tile 64 -> 3 blocks
    x2 = jax.random.randint(kx, (B2, S2), 0, 8, dtype=jnp.int32)
    y2 = jax.random.randint(ky, (B2, S2), 0, V, dtype=jnp.int32)
    l2 = jax.random.normal(kl, (B2, S2, V), dtype=jnp.float32).astype(jnp.bfloat16)
    loss2 = jax.block_until_ready(
        masked_character_loss(x2, y2, l2, mask_token_idx, row_tile=64))
    ref2 = _reference(x2, y2, l2.astype(jnp.float32), mask_token_idx)
    assert jnp.allclose(loss2, ref2, rtol=2e-2, atol=2e-2), (loss2, ref2)

    print("KERNEL_OK")
</pallas_src>

<mosaic_0001>
module attributes {stable_mosaic.version = 11 : i64} {
  func.func @_masked_ce_sum_kernel(%arg0: i32, %arg1: i32, %arg2: memref<16x1xi32, #tpu.memory_space<vmem>>, %arg3: memref<16x32xf32, #tpu.memory_space<vmem>>, %arg4: memref<1x1x1xf32, #tpu.memory_space<vmem>>) attributes {dimension_semantics = [#tpu.dimension_semantics<parallel>, #tpu.dimension_semantics<arbitrary>], iteration_bounds = array<i64: 1, 1>, scalar_prefetch = 0 : i64, scratch_operands = 0 : i64, tpu.core_type = #tpu.core_type<tc>, window_params = [{transform_indices = @transform_0, window_bounds = array<i64: 16, 1>}, {transform_indices = @transform_1, window_bounds = array<i64: 16, 32>}, {transform_indices = @transform_2, window_bounds = array<i64: 1, 1, 1>}]} {
    %c0_i32 = arith.constant 0 : i32
    %0 = arith.cmpi eq, %arg1, %c0_i32 : i32
    %1 = arith.extui %0 : i1 to i32
    %c0_i32_0 = arith.constant 0 : i32
    %2 = arith.cmpi ne, %1, %c0_i32_0 : i32
    scf.if %2 {
      %cst_16 = arith.constant 0.000000e+00 : f32
      %34 = vector.broadcast %cst_16 : f32 to vector<1x1x1xf32>
      %c0_17 = arith.constant 0 : index
      %c0_18 = arith.constant 0 : index
      %c0_19 = arith.constant 0 : index
      %35 = vector.load %arg4[%c0_17, %c0_18, %c0_19] : memref<1x1x1xf32, #tpu.memory_space<vmem>>, vector<1x1x1xf32>
      tpu.vector_store %arg4[%c0_17, %c0_18, %c0_19], %34 {strides = array<i32>} : memref<1x1x1xf32, #tpu.memory_space<vmem>>, vector<1x1x1xf32>,
    } else {
    }
    %c0 = arith.constant 0 : index
    %c0_1 = arith.constant 0 : index
    %3 = vector.load %arg3[%c0, %c0_1] : memref<16x32xf32, #tpu.memory_space<vmem>>, vector<16x32xf32>
    %c0_2 = arith.constant 0 : index
    %c0_3 = arith.constant 0 : index
    %4 = vector.load %arg2[%c0_2, %c0_3] : memref<16x1xi32, #tpu.memory_space<vmem>>, vector<16x1xi32>
    %cst = arith.constant dense<0xFF800000> : vector<16xf32>
    %5 = vector.multi_reduction <maximumf>, %3, %cst [1] : vector<16x32xf32> to vector<16xf32>
    %6 = vector.shape_cast %5 : vector<16xf32> to vector<16x1xf32>
    %7 = vector.broadcast %6 : vector<16x1xf32> to vector<16x32xf32>
    %8 = arith.subf %3, %7 : vector<16x32xf32>
    %9 = math.exp %8 : vector<16x32xf32>
    %cst_4 = arith.constant dense<0.000000e+00> : vector<16xf32>
    %10 = vector.multi_reduction <add>, %9, %cst_4 [1] : vector<16x32xf32> to vector<16xf32>
    %11 = vector.shape_cast %10 : vector<16xf32> to vector<16x1xf32>
    %12 = math.log %11 : vector<16x1xf32>
    %13 = arith.addf %6, %12 : vector<16x1xf32>
    %14 = tpu.iota {dimensions = array<i32: 1>} : vector<16x32xi32>
    %15 = vector.broadcast %4 : vector<16x1xi32> to vector<16x32xi32>
    %16 = arith.cmpi eq, %14, %15 : vector<16x32xi32>
    %cst_5 = arith.constant 0.000000e+00 : f32
    %17 = vector.broadcast %cst_5 : f32 to vector<16x32xf32>
    %18 = arith.select %16, %3, %17 : vector<16x32xi1>, vector<16x32xf32>
    %cst_6 = arith.constant dense<0.000000e+00> : vector<16xf32>
    %19 = vector.multi_reduction <add>, %18, %cst_6 [1] : vector<16x32xf32> to vector<16xf32>
    %20 = vector.shape_cast %19 : vector<16xf32> to vector<16x1xf32>
    %c0_i32_7 = arith.constant 0 : i32
    %21 = vector.broadcast %c0_i32_7 : i32 to vector<16x1xi32>
    %22 = arith.cmpi sge, %4, %21 : vector<16x1xi32>
    %23 = arith.subf %13, %20 : vector<16x1xf32>
    %cst_8 = arith.constant 0.000000e+00 : f32
    %24 = vector.broadcast %cst_8 : f32 to vector<16x1xf32>
    %25 = arith.select %22, %23, %24 : vector<16x1xi1>, vector<16x1xf32>
    %26 = vector.shape_cast %25 : vector<16x1xf32> to vector<1x16x1xf32>
    %cst_9 = arith.constant dense<0.000000e+00> : vector<1xf32>
    %27 = vector.multi_reduction <add>, %26, %cst_9 [1, 2] : vector<1x16x1xf32> to vector<1xf32>
    %28 = vector.shape_cast %27 : vector<1xf32> to vector<1x1x1xf32>
    %29 = vector.extract %28[0, 0, 0] : f32 from vector<1x1x1xf32>
    %c0_10 = arith.constant 0 : index
    %c0_11 = arith.constant 0 : index
    %c0_12 = arith.constant 0 : index
    %30 = vector.load %arg4[%c0_10, %c0_11, %c0_12] : memref<1x1x1xf32, #tpu.memory_space<vmem>>, vector<1x1x1xf32>
    %31 = vector.broadcast %29 : f32 to vector<1x1x1xf32>
    %32 = arith.addf %30, %31 : vector<1x1x1xf32>
    %c0_13 = arith.constant 0 : index
    %c0_14 = arith.constant 0 : index
    %c0_15 = arith.constant 0 : index
    %33 = vector.load %arg4[%c0_13, %c0_14, %c0_15] : memref<1x1x1xf32, #tpu.memory_space<vmem>>, vector<1x1x1xf32>
    tpu.vector_store %arg4[%c0_13, %c0_14, %c0_15], %32 {strides = array<i32>} : memref<1x1x1xf32, #tpu.memory_space<vmem>>, vector<1x1x1xf32>,
    return
  }
  func.func @transform_0(%arg0: i32, %arg1: i32) -> (i32, i32) {
    %c1_i32 = arith.constant 1 : i32
    %0 = arith.muli %arg0, %c1_i32 : i32
    %1 = arith.addi %0, %arg1 : i32
    %c0_i32 = arith.constant 0 : i32
    %c0_i32_0 = arith.constant 0 : i32
    return %1, %c0_i32 : i32, i32
  }
  func.func @transform_1(%arg0: i32, %arg1: i32) -> (i32, i32) {
    %c1_i32 = arith.constant 1 : i32
    %0 = arith.muli %arg0, %c1_i32 : i32
    %1 = arith.addi %0, %arg1 : i32
    %c0_i32 = arith.constant 0 : i32
    %c0_i32_0 = arith.constant 0 : i32
    return %1, %c0_i32 : i32, i32
  }
  func.func @transform_2(%arg0: i32, %arg1: i32) -> (i32, i32, i32) {
    %c0_i32 = arith.constant 0 : i32
    %c0_i32_0 = arith.constant 0 : i32
    %c0_i32_1 = arith.constant 0 : i32
    return %arg0, %c0_i32, %c0_i32_0 : i32, i32, i32
  }
}

</mosaic_0001>

<bundles_post_ra>
// kernel: masked_character_loss.1
= control target key start
LH: loop header
LB: loop body
LE: loop exit
PB: predicated region body
PF: predicated region fallthrough
CT: control target
= control target key end

     0   :  { %vm66_vm0 = vcmask 261120   ;;  %v198_v4 = vmov 0   ;;  %s248_s0 = inlined_call_operand.vmem [shape: s32[16,1], index: 0, kind: input, shape index: {}]   ;;  %s249_s1 = inlined_call_operand.vmem [shape: f32[16,32], index: 1, kind: input, shape index: {}]   ;;  %s250_s2 = inlined_call_operand.hbm [shape: f32[1,1,1], index: 2, kind: output, shape index: {}]  }
   0x1   :  { %v62_v0 = vld [vmem:[%s249_s1] sm:$0xff]  ;;  %v63_v1 = vld [vmem:[%s249_s1 + $0x8] sm:$0xff]  ;;  %164 = vset.pattern.permute.xlu1 %v198_v4  ;;  %165 = vset.pattern.permute.xlu0 %v198_v4 }
   0x2   :  { %v64_v2 = vld [vmem:[%s248_s0] sm:$0xff]  ;;  %v67_v3 = vsel %vm66_vm0, %v62_v0, -inf }
   0x3   :  { %7 = vsyncpa [#allocation3], 0  ;;  %68 = vmax.xlane.f32.xlu0 %v67_v3  ;;  %94 = vperm.xlu1 %164, %v64_v2   ;;  %v70_v5 = vsel %vm66_vm0, %v63_v1, -inf  ;;  %v65_v6 = vld [vmem:[%s248_s0 + $0x8] sm:$0xff]  ;;  %v91_v11 = vlaneseq  ;;  %vm109_vm3 = vcmp.ge.s32.totalorder %v64_v2, 0  ;;  %vm115_vm5 = vcmask 7168  }
   0x4   :  { %vm110_vm4 = vcmp.ge.s32.totalorder %v65_v6, 0  ;;  %vm60_vm6 = vcmask 0   ;;  %v199_v42 = vmov 0.0   ;;  %s200_s0 = smov [#allocation2]  }
   0x5   :  { %v92_v15 = vand.u32 127, %v91_v11  ;;  %61 = vst.msk [vmem:[#allocation2] sm:$0x1] %vm60_vm6, %v199_v42  ;;  %s139_s1 = sshll.u32 %s200_s0, 4  ;;  %s140_s1 = int_to_ptr.vmem [resolvable:$true] %s139_s1 }
   0x6   :  { %s174_s18 = scalar_lea.vmem %s140_s1, 16  ;;  %s178_s19 = scalar_lea.vmem %s140_s1, 32 }
   0x7   :  { %71 = vmax.xlane.f32.xlu0 %v70_v5  ;;  %97 = vperm.xlu1 %164, %v65_v6   ;;  %p175_p0 = scmp.ne.s32.totalorder %s140_s1, %s174_s18  ;;  %p179_p1 = scmp.lt.s32.totalorder %s140_s1, %s140_s1 }
   0x8   :  { %p180_p2 = scmp.lt.s32.totalorder %s178_s19, %s174_s18 }
   0xa   :  { %p181_p3 = por %p180_p2, %p179_p1 }
   0xc   :  { %v128_v50 = vld [vmem:[#allocation2] sm:$0x1]  ;;  %p182_p4 = pnand %p181_p3, %p175_p0 }
  0x82   :  { %v95_v14 = vpop.permute.xlu1 %94 }
  0x83   :  { %vm99_vm1 = vcmp.eq.s32.totalorder %v92_v15, %v95_v14 }
  0x84   :  { %v101_v18 = vsel %vm99_vm1, %v62_v0, 0.0 }
  0x85   :  { %v103_v20 = vsel %vm66_vm0, %v101_v18, 0.0 }
  0x86   :  { %v98_v16 = vpop.permute.xlu1 %97 }
  0x87   :  { %vm100_vm2 = vcmp.eq.s32.totalorder %v92_v15, %v98_v16 }
  0x88   :  { %v102_v22 = vsel %vm100_vm2, %v63_v1, 0.0 }
  0x89   :  { %v106_v24 = vsel %vm66_vm0, %v102_v22, 0.0 }
  0x90   :  { %v69_v7 = vpop.xlane.xlu0 %68 }
  0x91   :  { %v73_v8 = vsub.f32 %v62_v0, %v69_v7 }
  0x93   :  { %v75_v9 = vmul.f32 1.442695, %v73_v8 }
  0x94   :  { %v72_v10 = vpop.xlane.xlu0 %71 }
  0x95   :  { %166 = vpow2.f32 %v75_v9  ;;  %v74_v12 = vsub.f32 %v63_v1, %v72_v10 }
  0x97   :  { %v77_v13 = vmul.f32 1.442695, %v74_v12 }
  0x99   :  { %168 = vpow2.f32 %v77_v13 }
  0x9f   :  { %v167_v17 = vpop.eup %166 }
  0xa0   :  { %v79_v19 = vsel %vm66_vm0, %v167_v17, 0.0 }
  0xa1   :  { %80 = vadd.xlane.f32.xlu0 %v79_v19 }
  0xa3   :  { %v169_v21 = vpop.eup %168 }
  0xa4   :  { %v82_v23 = vsel %vm66_vm0, %v169_v21, 0.0 }
  0xa5   :  { %83 = vadd.xlane.f32.xlu1 %v82_v23  ;;  %104 = vadd.xlane.f32.xlu0 %v103_v20 }
  0xa9   :  { %107 = vadd.xlane.f32.xlu0 %v106_v24 }
 0x12e   :  { %v81_v25 = vpop.xlane.xlu0 %80 }
 0x12f   :  { %170 = vlog2.f32 %v81_v25 }
 0x132   :  { %v84_v26 = vpop.xlane.xlu1 %83  ;;  %v105_v29 = vpop.xlane.xlu0 %104 }
 0x133   :  { %172 = vlog2.f32 %v84_v26 }
 0x136   :  { %v108_v35 = vpop.xlane.xlu0 %107 }
 0x139   :  { %v171_v27 = vpop.eup %170 }
 0x13a   :  { %v86_v28 = vmul.f32 0.6931472, %v171_v27 }
 0x13c   :  { %v89_v30 = vadd.f32 %v86_v28, %v69_v7 }
 0x13d   :  { %v173_v31 = vpop.eup %172 }
 0x13e   :  { %v88_v32 = vmul.f32 0.6931472, %v173_v31  ;;  %v111_v33 = vsub.f32 %v89_v30, %v105_v29 }
 0x140   :  { %v90_v34 = vadd.f32 %v88_v32, %v72_v10  ;;  %v113_v36 = vsel %vm109_vm3, %v111_v33, 0.0 }
 0x141   :  { %v116_v39 = vsel %vm115_vm5, %v113_v36, 0.0 }
 0x142   :  { %v112_v37 = vsub.f32 %v90_v34, %v108_v35 }
 0x144   :  { %v114_v38 = vsel %vm110_vm4, %v112_v37, 0.0 }
 0x145   :  { %v117_v40 = vsel %vm115_vm5, %v114_v38, 0.0 }
 0x146   :  { %v118_v41 = vadd.f32 %v117_v40, %v116_v39 }
 0x148   :  { %119 = vadd.xlane.f32.xlu0 %v118_v41 }
 0x1d5   :  { %v120_v43 = vpop.xlane.xlu0 %119 }
 0x1d6   :  { %v121_v44 = vrot.slane %v120_v43, 4 }
 0x1d8   :  { %v122_v45 = vadd.f32 %v121_v44, %v120_v43 }
 0x1da   :  { %v123_v46 = vrot.slane %v122_v45, 2 }
 0x1dc   :  { %v124_v47 = vadd.f32 %v123_v46, %v122_v45 }
 0x1de   :  { %v125_v48 = vrot.slane %v124_v47, 1 }
 0x1e0   :  { %v126_v49 = vadd.f32 %v125_v48, %v124_v47 }
 0x1e2   :  { %159 = vpush %v126_v49 }
 0x213   :  { %s160_s17 = spop %159 }
 0x214   :  { %v129_v51 = vstv %s160_s17 }
 0x215   :  { %v130_v52 = vadd.f32 %v129_v51, %v128_v50 }
 0x217   :  { %132 = vst.msk [vmem:[#allocation2] sm:$0x1] %vm60_vm6, %v130_v52 }
 0x218   :  { %185 = shalt.err (!%p182_p4)
}
 0x219   :  { %s186_s22 = scalar_lea.hbm %s250_s2, 16 }
 0x21a   :  { %p187_p5 = scmp.ne.s32.totalorder %s250_s2, %s186_s22  ;;  %p190_p6 = scmp.lt.u32.totalorder %s186_s22, %s250_s2 }
 0x21c   :  { %p192_p7 = pnand %p190_p6, %p187_p5 }
 0x21e   :  { %195 = shalt.err (!%p192_p7)
}
 0x21f   :  { %142 = dma.vmem_to_hbm [thread:$0]  %s140_s1, 16, %s250_s2, [#allocation3]  }
 0x220   :  { %196 = dma.done.wait [#allocation3], 16  }
 0x221   :  { %197 = vsyncadd [#allocation3], 4294967280 }
 0x222   :  { %146 = vsyncpa [#allocation3], 1 }

</bundles_post_ra>
